<compile_context>
chip_gen: v5e
topology: v5e:2x2
jax: 0.10.0
libtpu: 0.0.40
codegen_flags: <defaults>
</compile_context>

<pallas_src>
import functools

import jax
import jax.numpy as jnp
from jax.experimental import pallas as pl
from jax.experimental.pallas import tpu as pltpu


def attention_kernel(x_ref, w1_ref, b1_ref, w2_ref, b2_ref, ctx_ref, attw_ref,
                     *, s_valid, mxu_dtype=None):
    # x_ref:   (TB, S, H)  tile of batch rows (S already padded to 8k)
    # w1_ref:  (H, A), b1_ref: (1, A), w2_ref: (1, A)    (VMEM, constant index)
    # b2_ref:  (1, 1)                                    (SMEM scalar)
    # ctx_ref: (TB, H), attw_ref: (TB, S)                (lane-dense outputs)
    tb, s, hdim = x_ref.shape
    a = w1_ref.shape[1]

    # ---- Linear(H -> A) + tanh -------------------------------------------
    # Big-M MXU matmul (TB*S, H) @ (H, A).  S is a multiple of 8, so the
    # leading-dim merge/split reshapes are layout-free (no relayout copies).
    x2d = x_ref[...].reshape(tb * s, hdim)
    w1 = w1_ref[...]
    if mxu_dtype is not None:            # optional bf16 operands (v6e/v7x MXU)
        x2d = x2d.astype(mxu_dtype)
        w1 = w1.astype(mxu_dtype)
    h = jnp.tanh(                        # tanh rides the EUP slot
        jnp.dot(x2d, w1, preferred_element_type=jnp.float32) + b1_ref[...]
    )                                    # (TB*S, A) f32

    # ---- Linear(A -> 1): broadcast-multiply + lane reduce (no N=1 matmul) --
    scores = jnp.sum(h.reshape(tb, s, a) * w2_ref[...], axis=-1) + b2_ref[0, 0]

    # Mask padded sequence positions (branch only traced when S was padded).
    if s_valid < s:
        lane = jax.lax.broadcasted_iota(jnp.int32, (tb, s), 1)
        scores = jnp.where(lane < s_valid, scores, jnp.float32(-1e30))

    # ---- Softmax over the sequence axis (lane-axis reduce) ----------------
    m = jnp.max(scores, axis=-1, keepdims=True)
    e = jnp.exp(scores - m)
    denom = jnp.sum(e, axis=-1, keepdims=True)
    r = pl.reciprocal(denom, approx=True)        # EUP fast path
    r = r * (2.0 - denom * r)                    # one Newton step -> ~f32 exact
    w = e * r                                    # (TB, S)

    attw_ref[...] = w                            # lane-dense store

    # ---- context = sum_S softmax(scores) * x -------------------------------
    # Re-read x from its VMEM ref (3 vld/cycle) instead of keeping the big
    # (TB,S,H) value live across the matmul/softmax (avoids vreg spills).
    ctx_ref[...] = jnp.sum(x_ref[...] * w[:, :, None], axis=1)       # (TB, H)


def _round_up(x, m):
    return ((x + m - 1) // m) * m


def _vmem_plan():
    """Generation-aware (tile budget, scoped vmem limit, multi-core?) plan."""
    try:
        phys = int(pltpu.get_tpu_info().vmem_capacity_bytes)
    except Exception:                   # fall back to the tightest generation
        phys = 64 << 20
    if phys <= (64 << 20):              # v7x: 64 MiB per TC, 2 TCs per chip
        return (36 << 20), (48 << 20), True
    # v5e / v6e: 128 MiB physical VMEM, single TensorCore
    return (48 << 20), (64 << 20), False


def _choose_batch_tile(B, Sp, H, A, budget, multi_core):
    """Largest 8-aligned batch tile fitting the VMEM budget (~2048 rows/step)."""
    # Per batch row (f32 bytes): double-buffered x tile + reloaded x value +
    # weighted-x temp (4*Sp*H), h temp (Sp*A), double-buffered outputs.
    per_row = (4 * Sp * H + Sp * A + 2 * (H + Sp)) * 4
    fixed = 2 * (H * A + 2 * A) * 4 + (1 << 20)          # weights + slack
    vmem_rows = max(1, (budget - fixed) // per_row)
    tb = min(max(1, 2048 // max(Sp, 1)), vmem_rows)      # ~2048 MXU rows/step
    if multi_core and B >= 16:
        # Keep >= 2 grid steps so megacore can split the batch axis over TCs.
        tb = min(tb, max(8, (B // 2) // 8 * 8))
    if tb >= B:
        return B                       # single full-extent tile, no padding
    tb8 = (tb // 8) * 8
    if tb8 >= 8:
        return tb8
    # Even 8 rows exceed the planning budget (huge S*H): fall back and rely on
    # the raised scoped-VMEM limit's headroom.
    # TODO(synk): add a sequence grid axis (online softmax + running context
    # accumulator) so very long sequences don't need a full (TB,S,H) slab.
    return B if B <= 8 else 8


def attention_layer(x, w1, b1, w2, b2, tb=None, mxu_dtype=None):
    """context (B,H), attention_weights (B,S,1) = AttentionLayer.forward(x)."""
    B, S, H = x.shape
    A = w1.shape[1]

    budget, vmem_limit, multi_core = _vmem_plan()

    # Pad S to a sublane multiple so in-kernel reshapes are layout-free.
    Sp = max(8, _round_up(S, 8))
    if tb is None:
        tb = _choose_batch_tile(B, Sp, H, A, budget, multi_core)
    Bp = _round_up(B, tb)

    xp = x
    if (Bp, Sp) != (B, S):
        xp = jnp.pad(x, ((0, Bp - B), (0, Sp - S), (0, 0)))

    b1_row = b1.reshape(1, A)
    w2_row = w2.reshape(1, A)          # (A, 1) column -> (1, A) row
    b2_2d = b2.reshape(1, 1)

    kernel = functools.partial(attention_kernel, s_valid=S, mxu_dtype=mxu_dtype)

    cost = pl.CostEstimate(
        flops=2 * Bp * Sp * H * A + 2 * Bp * Sp * (A + H),
        transcendentals=Bp * Sp * (A + 1),
        bytes_accessed=4 * (Bp * Sp * H + H * A + 2 * A + 1 + Bp * (H + Sp)),
    )

    ctx, attw = pl.pallas_call(
        kernel,
        out_shape=(
            jax.ShapeDtypeStruct((Bp, H), jnp.float32),
            jax.ShapeDtypeStruct((Bp, Sp), jnp.float32),   # lane-dense weights
        ),
        grid_spec=pltpu.PrefetchScalarGridSpec(
            num_scalar_prefetch=0,
            grid=(Bp // tb,),
            in_specs=[
                pl.BlockSpec((tb, Sp, H), lambda b: (b, 0, 0)),
                pl.BlockSpec((H, A), lambda b: (0, 0)),
                pl.BlockSpec((1, A), lambda b: (0, 0)),
                pl.BlockSpec((1, A), lambda b: (0, 0)),
                pl.BlockSpec(memory_space=pltpu.MemorySpace.SMEM),  # b2 scalar
            ],
            out_specs=[
                pl.BlockSpec((tb, H), lambda b: (b, 0)),
                pl.BlockSpec((tb, Sp), lambda b: (b, 0)),
            ],
        ),
        compiler_params=pltpu.CompilerParams(
            dimension_semantics=("parallel",),
            vmem_limit_bytes=vmem_limit,
        ),
        cost_estimate=cost,
    )(xp, w1, b1_row, w2_row, b2_2d)

    ctx = ctx[:B]
    attw = attw[:B, :S]
    # Restore the PyTorch output shape (B, S, 1) outside the kernel.
    return ctx, attw.reshape(B, S, 1)


def reference(x, w1, b1, w2, b2):
    scores = jnp.tanh(x @ w1 + b1) @ w2 + b2      # (B, S, 1)
    attw = jax.nn.softmax(scores, axis=1)
    ctx = jnp.sum(x * attw, axis=1)
    return ctx, attw


if __name__ == "__main__":
    B, S, H, A = 2, 8, 32, 64

    key = jax.random.PRNGKey(0)
    kx, k1, k2, k3, k4 = jax.random.split(key, 5)

    x = jax.random.normal(kx, (B, S, H), dtype=jnp.float32)
    # Deterministic parameter init (synthetic, matching nn.Linear shapes).
    w1 = jax.random.uniform(k1, (H, A), minval=-1.0 / H**0.5, maxval=1.0 / H**0.5,
                            dtype=jnp.float32)
    b1 = jax.random.uniform(k2, (A,), minval=-1.0 / H**0.5, maxval=1.0 / H**0.5,
                            dtype=jnp.float32)
    w2 = jax.random.uniform(k3, (A, 1), minval=-1.0 / A**0.5, maxval=1.0 / A**0.5,
                            dtype=jnp.float32)
    b2 = jax.random.uniform(k4, (1,), minval=-1.0 / A**0.5, maxval=1.0 / A**0.5,
                            dtype=jnp.float32)

    ctx, attw = attention_layer(x, w1, b1, w2, b2)
    jax.block_until_ready((ctx, attw))

    ctx_ref, attw_ref = reference(x, w1, b1, w2, b2)
    assert ctx.shape == (B, H) and attw.shape == (B, S, 1)
    assert jnp.allclose(ctx, ctx_ref, atol=1e-5, rtol=1e-5)
    assert jnp.allclose(attw, attw_ref, atol=1e-5, rtol=1e-5)

    # Exercise the batch-tiled / padded path (TB=8, B=20 padded to 24, 3 steps).
    B2 = 20
    x2 = jax.random.normal(jax.random.PRNGKey(1), (B2, S, H), dtype=jnp.float32)
    ctx2, attw2 = attention_layer(x2, w1, b1, w2, b2, tb=8)
    jax.block_until_ready((ctx2, attw2))
    ctx2_ref, attw2_ref = reference(x2, w1, b1, w2, b2)
    assert jnp.allclose(ctx2, ctx2_ref, atol=1e-5, rtol=1e-5)
    assert jnp.allclose(attw2, attw2_ref, atol=1e-5, rtol=1e-5)

    print("KERNEL_OK")
</pallas_src>

<mosaic_0001>
module attributes {stable_mosaic.version = 11 : i64} {
  func.func @attention_kernel(%arg0: i32, %arg1: memref<2x8x32xf32, #tpu.memory_space<vmem>>, %arg2: memref<32x64xf32, #tpu.memory_space<vmem>>, %arg3: memref<1x64xf32, #tpu.memory_space<vmem>>, %arg4: memref<1x64xf32, #tpu.memory_space<vmem>>, %arg5: memref<1x1xf32, #tpu.memory_space<smem>>, %arg6: memref<2x32xf32, #tpu.memory_space<vmem>>, %arg7: memref<2x8xf32, #tpu.memory_space<vmem>>) attributes {dimension_semantics = [#tpu.dimension_semantics<parallel>], iteration_bounds = array<i64: 1>, scalar_prefetch = 0 : i64, scratch_operands = 0 : i64, tpu.core_type = #tpu.core_type<tc>, window_params = [{transform_indices = @transform_0, window_bounds = array<i64: 2, 8, 32>}, {pipeline_mode = #tpu.pipeline_mode<synchronous>, transform_indices = @transform_1, window_bounds = array<i64: 32, 64>}, {pipeline_mode = #tpu.pipeline_mode<synchronous>, transform_indices = @transform_2, window_bounds = array<i64: 1, 64>}, {pipeline_mode = #tpu.pipeline_mode<synchronous>, transform_indices = @transform_3, window_bounds = array<i64: 1, 64>}, {transform_indices = @transform_4, window_bounds = array<i64: 1, 1>}, {transform_indices = @transform_5, window_bounds = array<i64: 2, 32>}, {transform_indices = @transform_6, window_bounds = array<i64: 2, 8>}]} {
    %c0 = arith.constant 0 : index
    %c0_0 = arith.constant 0 : index
    %c0_1 = arith.constant 0 : index
    %0 = vector.load %arg1[%c0, %c0_0, %c0_1] : memref<2x8x32xf32, #tpu.memory_space<vmem>>, vector<2x8x32xf32>
    %1 = vector.shape_cast %0 : vector<2x8x32xf32> to vector<16x32xf32>
    %c0_2 = arith.constant 0 : index
    %c0_3 = arith.constant 0 : index
    %2 = vector.load %arg2[%c0_2, %c0_3] : memref<32x64xf32, #tpu.memory_space<vmem>>, vector<32x64xf32>
    %cst = arith.constant dense<0.000000e+00> : vector<16x64xf32>
    %3 = tpu.matmul %1, %2, %cst {dimension_numbers = #tpu.dot_dimension_numbers<[1], [0], [0], [1], [0, 0, 1, 1], [], []>} : vector<16x32xf32>, vector<32x64xf32>, vector<16x64xf32> -> vector<16x64xf32>
    %c0_4 = arith.constant 0 : index
    %c0_5 = arith.constant 0 : index
    %4 = vector.load %arg3[%c0_4, %c0_5] : memref<1x64xf32, #tpu.memory_space<vmem>>, vector<1x64xf32>
    %5 = vector.broadcast %4 : vector<1x64xf32> to vector<16x64xf32>
    %6 = arith.addf %3, %5 : vector<16x64xf32>
    %7 = math.tanh %6 : vector<16x64xf32>
    %8 = vector.shape_cast %7 : vector<16x64xf32> to vector<2x8x64xf32>
    %c0_6 = arith.constant 0 : index
    %c0_7 = arith.constant 0 : index
    %9 = vector.load %arg4[%c0_6, %c0_7] : memref<1x64xf32, #tpu.memory_space<vmem>>, vector<1x64xf32>
    %10 = vector.shape_cast %9 : vector<1x64xf32> to vector<1x1x64xf32>
    %11 = vector.broadcast %10 : vector<1x1x64xf32> to vector<2x8x64xf32>
    %12 = arith.mulf %8, %11 : vector<2x8x64xf32>
    %cst_8 = arith.constant dense<0.000000e+00> : vector<2x8xf32>
    %13 = vector.multi_reduction <add>, %12, %cst_8 [2] : vector<2x8x64xf32> to vector<2x8xf32>
    %c0_9 = arith.constant 0 : index
    %c0_10 = arith.constant 0 : index
    %14 = memref.load %arg5[%c0_9, %c0_10] : memref<1x1xf32, #tpu.memory_space<smem>>
    %15 = vector.broadcast %14 : f32 to vector<2x8xf32>
    %16 = arith.addf %13, %15 : vector<2x8xf32>
    %cst_11 = arith.constant dense<0xFF800000> : vector<2xf32>
    %17 = vector.multi_reduction <maximumf>, %16, %cst_11 [1] : vector<2x8xf32> to vector<2xf32>
    %18 = vector.shape_cast %17 : vector<2xf32> to vector<2x1xf32>
    %19 = vector.broadcast %18 : vector<2x1xf32> to vector<2x8xf32>
    %20 = arith.subf %16, %19 : vector<2x8xf32>
    %21 = math.exp %20 : vector<2x8xf32>
    %cst_12 = arith.constant dense<0.000000e+00> : vector<2xf32>
    %22 = vector.multi_reduction <add>, %21, %cst_12 [1] : vector<2x8xf32> to vector<2xf32>
    %23 = vector.shape_cast %22 : vector<2xf32> to vector<2x1xf32>
    %24 = tpu.reciprocal %23 {approx = true} : vector<2x1xf32> -> vector<2x1xf32>
    %25 = arith.mulf %23, %24 : vector<2x1xf32>
    %cst_13 = arith.constant 2.000000e+00 : f32
    %26 = vector.broadcast %cst_13 : f32 to vector<2x1xf32>
    %27 = arith.subf %26, %25 : vector<2x1xf32>
    %28 = arith.mulf %24, %27 : vector<2x1xf32>
    %29 = vector.broadcast %28 : vector<2x1xf32> to vector<2x8xf32>
    %30 = arith.mulf %21, %29 : vector<2x8xf32>
    %c0_14 = arith.constant 0 : index
    %c0_15 = arith.constant 0 : index
    %31 = vector.load %arg7[%c0_14, %c0_15] : memref<2x8xf32, #tpu.memory_space<vmem>>, vector<2x8xf32>
    tpu.vector_store %arg7[%c0_14, %c0_15], %30 {strides = array<i32>} : memref<2x8xf32, #tpu.memory_space<vmem>>, vector<2x8xf32>,
    %c0_16 = arith.constant 0 : index
    %c0_17 = arith.constant 0 : index
    %c0_18 = arith.constant 0 : index
    %32 = vector.load %arg1[%c0_16, %c0_17, %c0_18] : memref<2x8x32xf32, #tpu.memory_space<vmem>>, vector<2x8x32xf32>
    %33 = vector.shape_cast %30 : vector<2x8xf32> to vector<2x8x1xf32>
    %34 = vector.broadcast %33 : vector<2x8x1xf32> to vector<2x8x32xf32>
    %35 = arith.mulf %32, %34 : vector<2x8x32xf32>
    %cst_19 = arith.constant dense<0.000000e+00> : vector<2x32xf32>
    %36 = vector.multi_reduction <add>, %35, %cst_19 [1] : vector<2x8x32xf32> to vector<2x32xf32>
    %c0_20 = arith.constant 0 : index
    %c0_21 = arith.constant 0 : index
    %37 = vector.load %arg6[%c0_20, %c0_21] : memref<2x32xf32, #tpu.memory_space<vmem>>, vector<2x32xf32>
    tpu.vector_store %arg6[%c0_20, %c0_21], %36 {strides = array<i32>} : memref<2x32xf32, #tpu.memory_space<vmem>>, vector<2x32xf32>,
    return
  }
  func.func @transform_0(%arg0: i32) -> (i32, i32, i32) {
    %c0_i32 = arith.constant 0 : i32
    %c0_i32_0 = arith.constant 0 : i32
    %c0_i32_1 = arith.constant 0 : i32
    return %arg0, %c0_i32, %c0_i32_0 : i32, i32, i32
  }
  func.func @transform_1(%arg0: i32) -> (i32, i32) {
    %c0_i32 = arith.constant 0 : i32
    %c0_i32_0 = arith.constant 0 : i32
    %c0_i32_1 = arith.constant 0 : i32
    return %c0_i32, %c0_i32_0 : i32, i32
  }
  func.func @transform_2(%arg0: i32) -> (i32, i32) {
    %c0_i32 = arith.constant 0 : i32
    %c0_i32_0 = arith.constant 0 : i32
    %c0_i32_1 = arith.constant 0 : i32
    return %c0_i32, %c0_i32_0 : i32, i32
  }
  func.func @transform_3(%arg0: i32) -> (i32, i32) {
    %c0_i32 = arith.constant 0 : i32
    %c0_i32_0 = arith.constant 0 : i32
    %c0_i32_1 = arith.constant 0 : i32
    return %c0_i32, %c0_i32_0 : i32, i32
  }
  func.func @transform_4(%arg0: i32) -> (i32, i32) {
    %c0_i32 = arith.constant 0 : i32
    %c0_i32_0 = arith.constant 0 : i32
    %c0_i32_1 = arith.constant 0 : i32
    return %c0_i32, %c0_i32_0 : i32, i32
  }
  func.func @transform_5(%arg0: i32) -> (i32, i32) {
    %c0_i32 = arith.constant 0 : i32
    %c0_i32_0 = arith.constant 0 : i32
    return %arg0, %c0_i32 : i32, i32
  }
  func.func @transform_6(%arg0: i32) -> (i32, i32) {
    %c0_i32 = arith.constant 0 : i32
    %c0_i32_0 = arith.constant 0 : i32
    return %arg0, %c0_i32 : i32, i32
  }
}

</mosaic_0001>

<bundles_post_ra>
// kernel: tpu_custom_call.1
= control target key start
LH: loop header
LB: loop body
LE: loop exit
PB: predicated region body
PF: predicated region fallthrough
CT: control target
= control target key end

     0   :  { %13 = vsyncpa [#allocation4], 0  ;;  %s453_s0 = inlined_call_operand.hbm [shape: f32[2,8,32], index: 0, kind: input, shape index: {}]   ;;  %s454_s1 = inlined_call_operand.hbm [shape: f32[32,64], index: 1, kind: input, shape index: {}]   ;;  %s455_s2 = inlined_call_operand.vmem [shape: f32[1,64], index: 2, kind: input, shape index: {}]   ;;  %s456_s3 = inlined_call_operand.vmem [shape: f32[1,64], index: 3, kind: input, shape index: {}]   ;;  %s457_s4 = inlined_call_operand.<no memory space> [shape: f32[1,1], index: 4, kind: input, shape index: {}]   ;;  %s458_s5 = inlined_call_operand.hbm [shape: f32[2,32], index: 5, kind: output, shape index: {0}]   ;;  %s459_s6 = inlined_call_operand.hbm [shape: f32[2,8], index: 6, kind: output, shape index: {1}]  }
   0x1   :  { %14 = vsyncpa [#allocation7], 0 }
   0x2   :  { %15 = vsyncpa [#allocation5], 0 }
   0x3   :  { %16 = vsyncpa [#allocation10], 0  ;;  %s21_s23 = sshll.u32 %s453_s0, 4  ;;  %s371_s24 = smov [#allocation3]   ;;  %s22_s23 = int_to_ptr.hbm [resolvable:$true] %s21_s23 }
   0x4   :  { %s23_s25 = sshll.u32 %s371_s24, 4  ;;  %s34_s28 = sshll.u32 %s454_s1, 4  ;;  %s24_s25 = int_to_ptr.vmem [resolvable:$true] %s23_s25  ;;  %s35_s28 = int_to_ptr.hbm [resolvable:$true] %s34_s28 }
   0x5   :  { %s372_s29 = smov 128   ;;  %s373_s30 = smov 8  }
   0x6   :  { %29 = dma.hbm_to_vmem [thread:$0]  %s22_s23, 256, %s24_s25, [#allocation4], %s372_s29, %s372_s29, %s373_s30  }
   0x7   :  { %s374_s7 = smov [#allocation6]  }
   0x8   :  { %s36_s8 = sshll.u32 %s374_s7, 4  ;;  %s37_s8 = int_to_ptr.vmem [resolvable:$true] %s36_s8 }
   0x9   :  { %42 = dma.hbm_to_vmem [thread:$0]  %s35_s28, 512, %s37_s8, [#allocation7], %s372_s29, %s372_s29, %s373_s30  }
   0xa   :  { %363 = dma.done.wait [#allocation4], 256  }
   0xb   :  { %364 = vsyncadd [#allocation4], 4294967040 }
   0xc   :  { %365 = dma.done.wait [#allocation7], 512  }
   0xd   :  { %366 = vsyncadd [#allocation7], 4294966784  ;;  %v62_v0 = vld [vmem:[#allocation6 + $0x18] sm:$0xff]  ;;  %v61_v1 = vld [vmem:[#allocation6 + $0x10] sm:$0xff]  ;;  %vm67_vm0 = vcmask 261120   ;;  %vm105_vm1 = vcmask 523264   ;;  %v118_v19 = vlaneseq  ;;  %v113_v20 = vstv %s457_s4 }
   0xe   :  { %86 = vmatpush.msra.mxu0 %v62_v0  ;;  %241 = vmatpush.msra.mxu1 %v62_v0  ;;  %v60_v2 = vld [vmem:[#allocation6 + $0x8] sm:$0xff]  ;;  %v59_v3 = vld [vmem:[#allocation6] sm:$0xff]  ;;  %v419_v4 = vld [vmem:[#allocation3] sm:$0xff]  ;;  %vm122_vm2 = vcmask 1041409   ;;  %vm125_vm3 = vcmask 58368   ;;  %v375_v29 = vmov 0  }
   0xf   :  { %v421_v5 = vld [vmem:[#allocation3 + $0x8] sm:$0xff]  ;;  %v255_v6 = vld [vmem:[%s455_s2] ss:$0 sm:$0xff]  ;;  %v119_v21 = vand.u32 127, %v118_v19  ;;  %253 = vset.pattern.permute.xlu2 %v375_v29  ;;  %252 = vset.pattern.permute.xlu1 %v375_v29  ;;  %s223_s14 = sshll.u32 %s459_s6, 4  ;;  %s377_s6 = smov [#allocation8]   ;;  %s224_s14 = int_to_ptr.hbm [resolvable:$true] %s223_s14 }
  0x10   :  { %87 = vmatpush.msra.mxu0 %v61_v1  ;;  %242 = vmatpush.msra.mxu1 %v61_v1  ;;  %v256_v11 = vld [vmem:[%s456_s3] ss:$0 sm:$0xff]  ;;  %s376_s3 = smov [#allocation9]   ;;  %s210_s15 = sshll.u32 %s377_s6, 4  ;;  %vm203_vm4 = vcmask 254976   ;;  %s211_s15 = int_to_ptr.vmem [resolvable:$true] %s210_s15 }
  0x11   :  { %254 = vset.pattern.permute.xlu0 %v375_v29  ;;  %s221_s4 = sshll.u32 %s376_s3, 4  ;;  %s212_s18 = sshll.u32 %s458_s5, 4  ;;  %s222_s4 = int_to_ptr.vmem [resolvable:$true] %s221_s4  ;;  %s213_s18 = int_to_ptr.hbm [resolvable:$true] %s212_s18 }
  0x12   :  { %88 = vmatpush.msra.mxu0 %v60_v2  ;;  %243 = vmatpush.msra.mxu1 %v60_v2 }
  0x14   :  { %89 = vmatpush.msra.mxu0 %v59_v3  ;;  %244 = vmatpush.msra.mxu1 %v59_v3 }
  0x15   :  { %239 = vmatmul.msk.f32.vlgmr.msra.gmra.mxu0 %vm67_vm0, %v419_v4  ;;  %240 = vmatmul.msk.f32.vlgmr.msra.gmra.mxu1 %vm67_vm0, %v421_v5 }
  0x92   :  { %v91_v7 = vpop.f32.mrf.mxu0  ;;  %v94_v8 = vpop.f32.mrf.mxu1 }
  0x93   :  { %v92_v9 = vadd.f32 %v255_v6, %v91_v7  ;;  %v95_v10 = vadd.f32 %v255_v6, %v94_v8 }
  0x95   :  { %257 = vtanh.f32 %v92_v9 }
  0x96   :  { %259 = vtanh.f32 %v95_v10 }
  0x9b   :  { %v258_v12 = vpop.eup %257 }
  0x9c   :  { %v103_v13 = vmul.f32 %v258_v12, %v256_v11  ;;  %v260_v14 = vpop.eup %259 }
  0x9d   :  { %v104_v16 = vmul.f32 %v260_v14, %v256_v11 }
  0x9e   :  { %v106_v15 = vsel %vm105_vm1, %v103_v13, 0.0 }
  0x9f   :  { %107 = vadd.xlane.f32.xlu0 %v106_v15  ;;  %v109_v17 = vsel %vm105_vm1, %v104_v16, 0.0 }
  0xa7   :  { %110 = vadd.xlane.f32.xlu0 %v109_v17 }
 0x112   :  { %v108_v18 = vpop.xlane.xlu0 %107 }
 0x113   :  { %v114_v22 = vadd.f32 %v113_v20, %v108_v18 }
 0x115   :  { %v120_v25 = vperm.slane %v114_v22, %v119_v21 }
 0x11a   :  { %v111_v23 = vpop.xlane.xlu0 %110 }
 0x11b   :  { %v115_v24 = vadd.f32 %v113_v20, %v111_v23 }
 0x11d   :  { %v121_v26 = vperm.slane %v115_v24, %v119_v21 }
 0x11f   :  { %v123_v27 = vsel %vm122_vm2, %v121_v26, %v120_v25 }
 0x120   :  { %v126_v28 = vsel %vm125_vm3, %v123_v27, -inf }
 0x121   :  { %127 = vmax.xlane.f32.xlu1 %v126_v28 }
 0x194   :  { %v128_v30 = vpop.xlane.xlu1 %127 }
 0x195   :  { %v130_v31 = vperm.slane %v128_v30, 0  ;;  %v131_v32 = vperm.slane %v128_v30, 1 }
 0x197   :  { %v134_v33 = vsub.f32 %v114_v22, %v130_v31  ;;  %v135_v34 = vsub.f32 %v115_v24, %v131_v32 }
 0x199   :  { %v136_v35 = vmul.f32 1.442695, %v134_v33  ;;  %v138_v36 = vmul.f32 1.442695, %v135_v34 }
 0x19b   :  { %261 = vpow2.f32 %v136_v35 }
 0x19c   :  { %263 = vpow2.f32 %v138_v36 }
 0x1a1   :  { %v262_v37 = vpop.eup %261 }
 0x1a2   :  { %v264_v38 = vpop.eup %263  ;;  %143 = vperm.xlu1 %252, %v262_v37  }
 0x1a3   :  { %146 = vperm.xlu2 %253, %v264_v38  }
 0x1fd   :  { %v147_v39 = vpop.permute.xlu2 %146 }
 0x1fe   :  { %v149_v41 = vperm.slane %v147_v39, %v119_v21 }
 0x214   :  { %v144_v40 = vpop.permute.xlu1 %143 }
 0x215   :  { %v148_v42 = vperm.slane %v144_v40, %v119_v21 }
 0x217   :  { %v150_v43 = vsel %vm122_vm2, %v149_v41, %v148_v42 }
 0x218   :  { %v152_v44 = vsel %vm125_vm3, %v150_v43, 0.0 }
 0x219   :  { %153 = vadd.xlane.f32.xlu2 %v152_v44 }
 0x28c   :  { %v154_v45 = vpop.xlane.xlu2 %153 }
 0x28d   :  { %265 = vrcp.f32 %v154_v45 }
 0x293   :  { %v266_v46 = vpop.eup %265 }
 0x294   :  { %v156_v47 = vmul.f32 %v266_v46, %v154_v45 }
 0x296   :  { %v157_v48 = vsub.f32 2.0, %v156_v47 }
 0x298   :  { %v158_v49 = vmul.f32 %v266_v46, %v157_v48 }
 0x29a   :  { %v160_v50 = vperm.slane %v158_v49, 0  ;;  %v161_v51 = vperm.slane %v158_v49, 1 }
 0x29c   :  { %v165_v52 = vmul.f32 %v264_v38, %v161_v51  ;;  %v164_v53 = vmul.f32 %v262_v37, %v160_v50 }
 0x29e   :  { %172 = vperm.xlu1 %252, %v165_v52   ;;  %169 = vperm.xlu0 %254, %v164_v53  }
 0x310   :  { %v173_v54 = vpop.permute.xlu1 %172  ;;  %v170_v55 = vpop.permute.xlu0 %169 }
 0x311   :  { %v175_v56 = vperm.slane %v173_v54, %v119_v21  ;;  %v184_v57 = vmul.f32 %v173_v54, %v421_v5  ;;  %v174_v58 = vperm.slane %v170_v55, %v119_v21  ;;  %v183_v59 = vmul.f32 %v170_v55, %v419_v4 }
 0x313   :  { %v192_v60 = vsel %vm67_vm0, %v184_v57, 0.0  ;;  %v176_v61 = vsel %vm122_vm2, %v175_v56, %v174_v58  ;;  %v185_v62 = vsel %vm67_vm0, %v183_v59, 0.0 }
 0x314   :  { %v193_v63 = vrot.slane %v192_v60, 4  ;;  %v186_v0 = vrot.slane %v185_v62, 4  ;;  %178 = vst.msk [vmem:[#allocation9] sm:$0x3] %vm125_vm3, %v176_v61 }
 0x315   :  { %226 = dma.vmem_to_hbm [thread:$0]  %s222_s4, 32, %s224_s14, [#allocation10]  }
 0x316   :  { %v194_v1 = vadd.f32 %v193_v63, %v192_v60  ;;  %v187_v2 = vadd.f32 %v186_v0, %v185_v62 }
 0x318   :  { %v195_v3 = vrot.slane %v194_v1, 2  ;;  %v188_v5 = vrot.slane %v187_v2, 2 }
 0x31a   :  { %v196_v6 = vadd.f32 %v195_v3, %v194_v1  ;;  %v189_v7 = vadd.f32 %v188_v5, %v187_v2 }
 0x31c   :  { %v197_v4 = vrot.slane %v196_v6, 1  ;;  %v190_v8 = vrot.slane %v189_v7, 1 }
 0x31e   :  { %v198_v9 = vadd.f32 %v197_v4, %v196_v6  ;;  %v191_v10 = vadd.f32 %v190_v8, %v189_v7 }
 0x320   :  { %v201_v11 = vsel %vm122_vm2, %v198_v9, %v191_v10 }
 0x321   :  { %204 = vst.msk [vmem:[#allocation8] sm:$0x3] %vm203_vm4, %v201_v11 }
 0x322   :  { %215 = dma.vmem_to_hbm [thread:$0]  %s211_s15, 32, %s213_s18, [#allocation5]  }
 0x323   :  { %367 = dma.done.wait [#allocation5], 32  }
 0x324   :  { %368 = vsyncadd [#allocation5], 4294967264 }
 0x325   :  { %369 = dma.done.wait [#allocation10], 32  }
 0x326   :  { %370 = vsyncadd [#allocation10], 4294967264 }
 0x327   :  { %235 = vsyncpa [#allocation4], 1 }
 0x328   :  { %236 = vsyncpa [#allocation7], 1 }
 0x329   :  { %237 = vsyncpa [#allocation5], 1 }
 0x32a   :  { %238 = vsyncpa [#allocation10], 1 }

</bundles_post_ra>
